<compile_context>
chip_gen: v5e
topology: v5e:2x2
jax: 0.10.0
libtpu: 0.0.40
codegen_flags: <defaults>
</compile_context>

<pallas_src>
import math

import jax
import jax.numpy as jnp
from jax.experimental import pallas as pl
from jax.experimental.pallas import tpu as pltpu

_LANE = 128
# Target bytes per block buffer (keeps 2x-double-buffered in+out well inside
# the default scoped VMEM on v5e/v6e/v7x: 4 * 2 MiB = 8 MiB).
_TARGET_BLOCK_BYTES = 2 * 1024 * 1024


def _copy_kernel(x_ref, o_ref):
    # Identity copy of one large lane-dense tile — the only "compute" a view has.
    o_ref[...] = x_ref[...]


def _min_sublanes(dtype) -> int:
    """Minimum sublane multiple per dtype packing (f32:8, bf16:16, int8/fp8:32)."""
    itemsize = jnp.dtype(dtype).itemsize
    if itemsize >= 4:
        return 8
    if itemsize == 2:
        return 16
    return 32


def _resolve_shape(shape, total):
    """Resolve a single -1 entry like torch.Tensor.view does."""
    shape = list(shape)
    neg = [i for i, s in enumerate(shape) if s == -1]
    if len(neg) > 1:
        raise ValueError("only one dimension can be inferred (-1)")
    if neg:
        known = math.prod(s for s in shape if s != -1)
        if known == 0 or total % known != 0:
            raise ValueError(f"cannot view {total} elements as {tuple(shape)}")
        shape[neg[0]] = total // known
    if math.prod(shape) != total:
        raise ValueError(f"shape {tuple(shape)} invalid for {total} elements")
    return tuple(shape)


def _pick_staging(total, dtype):
    """Choose a lane-dense (rows, lanes) staging shape, or None if not tileable."""
    sub_min = _min_sublanes(dtype)
    # Prefer the widest lane count (fewer, larger DMA descriptors; unmasked vst).
    for lanes in (4096, 2048, 1024, 512, 256, _LANE):
        if total % lanes != 0:
            continue
        rows = total // lanes
        if rows % sub_min == 0:
            return rows, lanes, sub_min
    return None


def _pallas_identity_copy(x2d, rows, lanes, sub_min):
    itemsize = jnp.dtype(x2d.dtype).itemsize
    # Largest sublane-aligned block that stays under the per-buffer byte target.
    target_rows = max(sub_min, (_TARGET_BLOCK_BYTES // (lanes * itemsize)) // sub_min * sub_min)
    block_rows = min(rows, target_rows)
    grid = (pl.cdiv(rows, block_rows),)
    return pl.pallas_call(
        _copy_kernel,
        out_shape=jax.ShapeDtypeStruct((rows, lanes), x2d.dtype),
        grid=grid,
        in_specs=[pl.BlockSpec((block_rows, lanes), lambda i: (i, 0))],
        out_specs=pl.BlockSpec((block_rows, lanes), lambda i: (i, 0)),
        compiler_params=pltpu.CompilerParams(
            dimension_semantics=("parallel",)  # shards across TCs on v7x megacore
        ),
    )(x2d)


class View:
    """JAX/Pallas port of the PyTorch `View` module (basic reshape)."""

    def __init__(self, *shape):
        self.shape = shape

    def __call__(self, x, use_kernel=False):
        total = x.size
        out_shape = _resolve_shape(self.shape, total)

        if not use_kernel:
            # A view of a contiguous array is metadata-only: zero HBM traffic.
            return x.reshape(out_shape)

        staging = _pick_staging(total, x.dtype)
        if staging is None:
            # Ragged element count: skip the kernel rather than pad+slice
            # (which would add two extra full HBM passes).
            return x.reshape(out_shape)

        rows, lanes, sub_min = staging
        x2d = x.reshape(rows, lanes)          # metadata-only (row-major contiguous)
        out2d = _pallas_identity_copy(x2d, rows, lanes, sub_min)
        return out2d.reshape(out_shape)       # metadata-only


if __name__ == "__main__":
    key = jax.random.PRNGKey(0)
    # Typical cortex_DIM usage: flatten conv features, e.g. View(-1, C*H*W).
    B, C, H, W = 2, 4, 16, 16
    x = jax.random.normal(key, (B, C, H, W), dtype=jnp.float32)

    view = View(-1, C * H * W)

    # Kernel path (f32).
    y = view(x, use_kernel=True)
    jax.block_until_ready(y)
    ref = x.reshape(B, C * H * W)
    assert y.shape == (B, C * H * W), y.shape
    assert y.dtype == x.dtype
    assert bool(jnp.array_equal(y, ref))

    # Kernel path with a packed dtype (exercises dtype-aware sublane tiling).
    x_bf16 = x.astype(jnp.bfloat16)
    y_bf16 = view(x_bf16, use_kernel=True)
    jax.block_until_ready(y_bf16)
    assert bool(jnp.array_equal(y_bf16, x_bf16.reshape(B, C * H * W)))

    # Default (free, metadata-only) path.
    y_fast = view(x)
    assert bool(jnp.array_equal(y_fast, ref))

    print("KERNEL_OK")
</pallas_src>

<mosaic_0001>
module attributes {stable_mosaic.version = 11 : i64} {
  func.func @_copy_kernel(%arg0: i32, %arg1: memref<8x256xf32, #tpu.memory_space<vmem>>, %arg2: memref<8x256xf32, #tpu.memory_space<vmem>>) attributes {dimension_semantics = [#tpu.dimension_semantics<parallel>], iteration_bounds = array<i64: 1>, scalar_prefetch = 0 : i64, scratch_operands = 0 : i64, tpu.core_type = #tpu.core_type<tc>, window_params = [{transform_indices = @transform_0, window_bounds = array<i64: 8, 256>}, {transform_indices = @transform_1, window_bounds = array<i64: 8, 256>}]} {
    %c0 = arith.constant 0 : index
    %c0_0 = arith.constant 0 : index
    %0 = vector.load %arg1[%c0, %c0_0] : memref<8x256xf32, #tpu.memory_space<vmem>>, vector<8x256xf32>
    %c0_1 = arith.constant 0 : index
    %c0_2 = arith.constant 0 : index
    %1 = vector.load %arg2[%c0_1, %c0_2] : memref<8x256xf32, #tpu.memory_space<vmem>>, vector<8x256xf32>
    tpu.vector_store %arg2[%c0_1, %c0_2], %0 {strides = array<i32>} : memref<8x256xf32, #tpu.memory_space<vmem>>, vector<8x256xf32>,
    return
  }
  func.func @transform_0(%arg0: i32) -> (i32, i32) {
    %c0_i32 = arith.constant 0 : i32
    %c0_i32_0 = arith.constant 0 : i32
    return %arg0, %c0_i32 : i32, i32
  }
  func.func @transform_1(%arg0: i32) -> (i32, i32) {
    %c0_i32 = arith.constant 0 : i32
    %c0_i32_0 = arith.constant 0 : i32
    return %arg0, %c0_i32 : i32, i32
  }
}

</mosaic_0001>

<bundles_post_ra>
// kernel: tpu_custom_call.1
= control target key start
LH: loop header
LB: loop body
LE: loop exit
PB: predicated region body
PF: predicated region fallthrough
CT: control target
= control target key end

     0   :  { %6 = vsyncpa [#allocation3], 0  ;;  %s116_s0 = inlined_call_operand.hbm [shape: f32[8,256], index: 0, kind: input, shape index: {}]   ;;  %s117_s1 = inlined_call_operand.hbm [shape: f32[8,256], index: 1, kind: output, shape index: {}]  }
   0x1   :  { %7 = vsyncpa [#allocation4], 0  ;;  %s13_s8 = sshll.u32 %s116_s0, 4  ;;  %s98_s9 = smov [#allocation2]   ;;  %s14_s8 = int_to_ptr.hbm [resolvable:$true] %s13_s8 }
   0x2   :  { %s15_s10 = sshll.u32 %s98_s9, 4  ;;  %s16_s10 = int_to_ptr.vmem [resolvable:$true] %s15_s10 }
   0x3   :  { %18 = dma.hbm_to_vmem [thread:$0]  %s14_s8, 256, %s16_s10, [#allocation3]  }
   0x4   :  { %94 = dma.done.wait [#allocation3], 256  }
   0x5   :  { %95 = vsyncadd [#allocation3], 4294967040  ;;  %s99_s11 = smov [#allocation5]   ;;  %s34_s15 = sshll.u32 %s117_s1, 4  ;;  %v23_v0 = vld [vmem:[#allocation2] sm:$0xff]  ;;  %v24_v1 = vld [vmem:[#allocation2 + $0x8] sm:$0xff]  ;;  %s35_s15 = int_to_ptr.hbm [resolvable:$true] %s34_s15 }
   0x6   :  { %s32_s12 = sshll.u32 %s99_s11, 4  ;;  %25 = vst [vmem:[#allocation5] sm:$0xff] %v23_v0  ;;  %s33_s12 = int_to_ptr.vmem [resolvable:$true] %s32_s12 }
   0x7   :  { %26 = vst [vmem:[#allocation5 + $0x8] sm:$0xff] %v24_v1 }
   0x8   :  { %37 = dma.vmem_to_hbm [thread:$0]  %s33_s12, 256, %s35_s15, [#allocation4]  }
   0x9   :  { %96 = dma.done.wait [#allocation4], 256  }
   0xa   :  { %97 = vsyncadd [#allocation4], 4294967040 }
   0xb   :  { %42 = vsyncpa [#allocation3], 1 }
   0xc   :  { %43 = vsyncpa [#allocation4], 1 }

</bundles_post_ra>
